<compile_context>
chip_gen: v7x
topology: tpu7x:2x2x1
jax: 0.10.0
libtpu: 0.0.40
codegen_flags: <defaults>
</compile_context>

<pallas_src>
import functools

import jax
import jax.numpy as jnp
from jax.experimental import pallas as pl
from jax.experimental.pallas import tpu as pltpu

LANE = 128  # vreg lane width; all feature dims are zero-padded to this.


def _round_up(n, m):
    return ((n + m - 1) // m) * m


def _pad2(a, rows, cols, dtype=None):
    dtype = a.dtype if dtype is None else dtype
    out = jnp.zeros((rows, cols), dtype)
    return out.at[: a.shape[0], : a.shape[1]].set(a.astype(dtype))


def _directed_norm_dense(adj):
    """D_out^{-1/2} A D_in^{-1/2}, with inf -> 0 on zero degrees (dense)."""
    in_deg = adj.sum(axis=0)
    out_deg = adj.sum(axis=1)
    in_inv = jnp.where(in_deg > 0, jax.lax.rsqrt(in_deg), 0.0)
    out_inv = jnp.where(out_deg > 0, jax.lax.rsqrt(out_deg), 0.0)
    return out_inv[:, None] * adj * in_inv[None, :]


def precompute_norm_adjs(edge_index, num_nodes):
    """Mirrors the module's one-time cached adj_norm / adj_t_norm construction.

    directed_norm(A^T) = D_in(A)^{-1/2} A^T D_out(A)^{-1/2} = directed_norm(A)^T,
    so adj_t_norm is just the transpose (no second normalization pass).
    """
    row, col = edge_index
    adj = jnp.zeros((num_nodes, num_nodes), jnp.float32).at[row, col].add(1.0)
    adj_norm = _directed_norm_dense(adj)
    return adj_norm, adj_norm.T


# ----------------------------- parameter folding --------------------------- #

def fold_params(params, alpha):
    """Fold alpha, both linears, and both heads into 2 matrices + 1 bias.

    out = alpha*(agg_s2d@W1 + b1)@Wh + (1-alpha)*(agg_d2s@W2 + b2)@Wh + bh
        = agg_s2d @ M1 + agg_d2s @ M2 + b_out
    with Wh = [W_sf | W_ptx] (cols 0:6 = SF head, 6:11 = Ptx head).
    """
    w1, b1 = params["lin_src_to_dst"]
    w2, b2 = params["lin_dst_to_src"]
    wsf, bsf = params["fc3_6_class"]
    wptx, bptx = params["fc3_5_class"]
    w_head = jnp.concatenate([wsf, wptx], axis=1)           # (out_dim, 11)
    b_head = jnp.concatenate([bsf, bptx], axis=0)            # (11,)
    a = jnp.float32(alpha)
    m1 = a * (w1 @ w_head)                                    # (in_dim, 11)
    m2 = (1.0 - a) * (w2 @ w_head)                            # (in_dim, 11)
    b_out = (a * b1 + (1.0 - a) * b2) @ w_head + b_head       # (11,)
    m_slab = jnp.stack([_pad2(m1, LANE, LANE, jnp.float32),
                        _pad2(m2, LANE, LANE, jnp.float32)])  # (2, 128, 128)
    b_slab = jnp.zeros((1, LANE), jnp.float32).at[0, : b_out.shape[0]].set(b_out)
    return m_slab, b_slab


# ----------------------------- Pallas kernel ------------------------------- #

def _dirgcn_kernel(adj_ref, adj_t_ref, x_ref, m_ref, b_ref, out_ref,
                   acc_s2d_ref, acc_d2s_ref):
    """One (node-tile i, contraction-tile k) step of the DirGCNConv forward.

    adj_ref   : (tile_n, tile_k) bf16   rows of adj_norm
    adj_t_ref : (tile_n, tile_k) bf16   rows of adj_t_norm (= adj_norm.T rows)
    x_ref     : (tile_k, 128)    bf16   node-feature slab for this k tile
    m_ref     : (2, 128, 128)    f32    folded [M1 | M2] (resident)
    b_ref     : (1, 128)         f32    folded output bias (resident)
    out_ref   : (tile_n, 128)    f32    cols 0:6 = SF logits, 6:11 = Ptx logits
    acc_*_ref : (tile_n, 128)    f32    propagation accumulators (scratch)
    """
    k = pl.program_id(1)

    @pl.when(k == 0)
    def _():
        acc_s2d_ref[...] = jnp.zeros_like(acc_s2d_ref)
        acc_d2s_ref[...] = jnp.zeros_like(acc_d2s_ref)

    xk = x_ref[...]
    acc_s2d_ref[...] += jnp.dot(adj_ref[...], xk,
                                preferred_element_type=jnp.float32)
    acc_d2s_ref[...] += jnp.dot(adj_t_ref[...], xk,
                                preferred_element_type=jnp.float32)

    @pl.when(k == pl.num_programs(1) - 1)
    def _():
        out_ref[...] = (
            jnp.dot(acc_s2d_ref[...], m_ref[0],
                    preferred_element_type=jnp.float32)
            + jnp.dot(acc_d2s_ref[...], m_ref[1],
                      preferred_element_type=jnp.float32)
            + b_ref[...]
        )


# ----------------------------- host-side wrapper --------------------------- #

def dirgcn_forward(x, edge_index, params, alpha, *, tile_n=512, tile_k=1024):
    num_nodes, input_dim = x.shape
    output_dim = params["lin_src_to_dst"][0].shape[1]
    # TODO(synk): feature dims > 128 would need an extra lane-axis tile; all
    # dims in this module are <= 128 so one padded vreg lane block suffices.
    assert input_dim <= LANE and output_dim <= LANE

    adj_norm, adj_t_norm = precompute_norm_adjs(edge_index, num_nodes)

    # Node-row tiling in multiples of 16 (bf16 sublane packing); contraction
    # tiling in multiples of 128 lanes (pick multiples of 256 on v6e/v7x).
    tile_n = max(16, min(_round_up(tile_n, 16), _round_up(num_nodes, 16)))
    tile_k = max(LANE, min(_round_up(tile_k, LANE), _round_up(num_nodes, LANE)))
    n_rows = _round_up(num_nodes, tile_n)
    n_cols = _round_up(num_nodes, tile_k)

    # bf16 the dominant HBM streams; all accumulation stays f32 in-kernel.
    adj_norm_p = _pad2(adj_norm, n_rows, n_cols, jnp.bfloat16)
    adj_t_norm_p = _pad2(adj_t_norm, n_rows, n_cols, jnp.bfloat16)
    x_p = _pad2(x, n_cols, LANE, jnp.bfloat16)
    m_slab, b_slab = fold_params(params, alpha)

    grid = (n_rows // tile_n, n_cols // tile_k)

    # Explicit VMEM budget: double-buffered blocked tensors + residents.
    vmem_bytes = (
        2 * (2 * tile_n * tile_k * 2      # adj / adj_t blocks (bf16) x 2 bufs
             + tile_k * LANE * 2          # x block (bf16) x 2 bufs
             + tile_n * LANE * 4)         # out block (f32) x 2 bufs
        + 2 * LANE * LANE * 4             # folded weight slab (resident)
        + LANE * 4                        # folded bias (resident)
        + 2 * tile_n * LANE * 4           # f32 accumulators (scratch)
    )
    vmem_limit = min(int(vmem_bytes * 1.5) + (4 << 20), 64 << 20)

    out = pl.pallas_call(
        _dirgcn_kernel,
        out_shape=jax.ShapeDtypeStruct((n_rows, LANE), jnp.float32),
        grid_spec=pltpu.PrefetchScalarGridSpec(
            num_scalar_prefetch=0,
            grid=grid,
            in_specs=[
                pl.BlockSpec((tile_n, tile_k), lambda i, k: (i, k)),    # adj
                pl.BlockSpec((tile_n, tile_k), lambda i, k: (i, k)),    # adj_t
                pl.BlockSpec((tile_k, LANE), lambda i, k: (k, 0)),      # x
                pl.BlockSpec((2, LANE, LANE), lambda i, k: (0, 0, 0)),  # M1|M2
                pl.BlockSpec((1, LANE), lambda i, k: (0, 0)),           # b_out
            ],
            out_specs=pl.BlockSpec((tile_n, LANE), lambda i, k: (i, 0)),
            scratch_shapes=[
                pltpu.VMEM((tile_n, LANE), jnp.float32),
                pltpu.VMEM((tile_n, LANE), jnp.float32),
            ],
        ),
        compiler_params=pltpu.CompilerParams(
            dimension_semantics=("parallel", "arbitrary"),
            vmem_limit_bytes=vmem_limit,
        ),
    )(adj_norm_p, adj_t_norm_p, x_p, m_slab, b_slab)

    x_sf = out[:num_nodes, :6]
    x_ptx = out[:num_nodes, 6:11]
    return x_sf, x_ptx


# ----------------------------- params / reference -------------------------- #

def init_params(key, input_dim, output_dim):
    """Deterministic params; weights stored as (in_features, out_features)."""
    dims = {
        "lin_src_to_dst": (input_dim, output_dim),
        "lin_dst_to_src": (input_dim, output_dim),
        "fc3_6_class": (output_dim, 6),
        "fc3_5_class": (output_dim, 5),
    }
    params = {}
    for name, (fan_in, fan_out) in dims.items():
        key, kw, kb = jax.random.split(key, 3)
        bound = 1.0 / jnp.sqrt(float(fan_in))
        w = jax.random.uniform(kw, (fan_in, fan_out), jnp.float32, -bound, bound)
        b = jax.random.uniform(kb, (fan_out,), jnp.float32, -bound, bound)
        params[name] = (w, b)
    return params


def dirgcn_reference(x, edge_index, params, alpha):
    num_nodes = x.shape[0]
    row, col = edge_index
    adj = jnp.zeros((num_nodes, num_nodes), jnp.float32).at[row, col].add(1.0)

    def dir_norm(a):
        in_deg = a.sum(0)
        out_deg = a.sum(1)
        in_inv = jnp.where(in_deg > 0, 1.0 / jnp.sqrt(in_deg), 0.0)
        out_inv = jnp.where(out_deg > 0, 1.0 / jnp.sqrt(out_deg), 0.0)
        return out_inv[:, None] * a * in_inv[None, :]

    adj_norm = dir_norm(adj)
    adj_t_norm = dir_norm(adj.T)
    lin = lambda h, p: h @ p[0] + p[1]
    y = alpha * lin(adj_norm @ x, params["lin_src_to_dst"]) + (1.0 - alpha) * lin(
        adj_t_norm @ x, params["lin_dst_to_src"]
    )
    return lin(y, params["fc3_6_class"]), lin(y, params["fc3_5_class"])


if __name__ == "__main__":
    input_dim = 8
    output_dim = 32
    alpha = 0.3
    num_nodes = 300      # exercises both the node axis (5 tiles) and k axis (3 tiles)
    num_edges = 1500

    key = jax.random.PRNGKey(0)
    key, kx, ke = jax.random.split(key, 3)
    x = jax.random.normal(kx, (num_nodes, input_dim), jnp.float32)
    edge_index = jax.random.randint(ke, (2, num_edges), 0, num_nodes, dtype=jnp.int32)

    params = init_params(key, input_dim, output_dim)

    fwd = jax.jit(
        functools.partial(dirgcn_forward, alpha=alpha, tile_n=64, tile_k=128)
    )
    x_sf, x_ptx = fwd(x, edge_index, params)
    jax.block_until_ready((x_sf, x_ptx))

    ref_sf, ref_ptx = dirgcn_reference(x, edge_index, params, alpha)
    assert x_sf.shape == (num_nodes, 6)
    assert x_ptx.shape == (num_nodes, 5)
    # bf16 adjacency / x streams (f32 accumulation) -> loosened tolerance.
    assert jnp.allclose(x_sf, ref_sf, atol=2e-2, rtol=2e-2)
    assert jnp.allclose(x_ptx, ref_ptx, atol=2e-2, rtol=2e-2)

    print("KERNEL_OK")
</pallas_src>

<mosaic_0001>
module attributes {stable_mosaic.version = 11 : i64} {
  func.func @_dirgcn_kernel(%arg0: i32, %arg1: i32, %arg2: memref<64x128xbf16, #tpu.memory_space<vmem>>, %arg3: memref<64x128xbf16, #tpu.memory_space<vmem>>, %arg4: memref<128x128xbf16, #tpu.memory_space<vmem>>, %arg5: memref<2x128x128xf32, #tpu.memory_space<vmem>>, %arg6: memref<1x128xf32, #tpu.memory_space<vmem>>, %arg7: memref<64x128xf32, #tpu.memory_space<vmem>>, %arg8: memref<64x128xf32, #tpu.memory_space<vmem>>, %arg9: memref<64x128xf32, #tpu.memory_space<vmem>>) attributes {dimension_semantics = [#tpu.dimension_semantics<parallel>, #tpu.dimension_semantics<arbitrary>], iteration_bounds = array<i64: 5, 3>, scalar_prefetch = 0 : i64, scratch_operands = 2 : i64, tpu.core_type = #tpu.core_type<tc>, window_params = [{transform_indices = @transform_0, window_bounds = array<i64: 64, 128>}, {transform_indices = @transform_1, window_bounds = array<i64: 64, 128>}, {transform_indices = @transform_2, window_bounds = array<i64: 128, 128>}, {pipeline_mode = #tpu.pipeline_mode<synchronous>, transform_indices = @transform_3, window_bounds = array<i64: 2, 128, 128>}, {pipeline_mode = #tpu.pipeline_mode<synchronous>, transform_indices = @transform_4, window_bounds = array<i64: 1, 128>}, {transform_indices = @transform_5, window_bounds = array<i64: 64, 128>}]} {
    %c0_i32 = arith.constant 0 : i32
    %0 = arith.cmpi eq, %arg1, %c0_i32 : i32
    %1 = arith.extui %0 : i1 to i32
    %c0_i32_0 = arith.constant 0 : i32
    %2 = arith.cmpi ne, %1, %c0_i32_0 : i32
    scf.if %2 {
      %cst_16 = arith.constant 0.000000e+00 : f32
      %17 = vector.broadcast %cst_16 : f32 to vector<64x128xf32>
      %c0_17 = arith.constant 0 : index
      %c0_18 = arith.constant 0 : index
      %18 = vector.load %arg8[%c0_17, %c0_18] : memref<64x128xf32, #tpu.memory_space<vmem>>, vector<64x128xf32>
      tpu.vector_store %arg8[%c0_17, %c0_18], %17 {strides = array<i32>} : memref<64x128xf32, #tpu.memory_space<vmem>>, vector<64x128xf32>,
      %cst_19 = arith.constant 0.000000e+00 : f32
      %19 = vector.broadcast %cst_19 : f32 to vector<64x128xf32>
      %c0_20 = arith.constant 0 : index
      %c0_21 = arith.constant 0 : index
      %20 = vector.load %arg9[%c0_20, %c0_21] : memref<64x128xf32, #tpu.memory_space<vmem>>, vector<64x128xf32>
      tpu.vector_store %arg9[%c0_20, %c0_21], %19 {strides = array<i32>} : memref<64x128xf32, #tpu.memory_space<vmem>>, vector<64x128xf32>,
    } else {
    }
    %c0 = arith.constant 0 : index
    %c0_1 = arith.constant 0 : index
    %3 = vector.load %arg4[%c0, %c0_1] : memref<128x128xbf16, #tpu.memory_space<vmem>>, vector<128x128xbf16>
    %c0_2 = arith.constant 0 : index
    %c0_3 = arith.constant 0 : index
    %4 = vector.load %arg8[%c0_2, %c0_3] : memref<64x128xf32, #tpu.memory_space<vmem>>, vector<64x128xf32>
    %c0_4 = arith.constant 0 : index
    %c0_5 = arith.constant 0 : index
    %5 = vector.load %arg2[%c0_4, %c0_5] : memref<64x128xbf16, #tpu.memory_space<vmem>>, vector<64x128xbf16>
    %cst = arith.constant dense<0.000000e+00> : vector<64x128xf32>
    %6 = tpu.matmul %5, %3, %cst {dimension_numbers = #tpu.dot_dimension_numbers<[1], [0], [0], [1], [0, 0, 1, 1], [], []>} : vector<64x128xbf16>, vector<128x128xbf16>, vector<64x128xf32> -> vector<64x128xf32>
    %7 = arith.addf %4, %6 : vector<64x128xf32>
    %c0_6 = arith.constant 0 : index
    %c0_7 = arith.constant 0 : index
    %8 = vector.load %arg8[%c0_6, %c0_7] : memref<64x128xf32, #tpu.memory_space<vmem>>, vector<64x128xf32>
    tpu.vector_store %arg8[%c0_6, %c0_7], %7 {strides = array<i32>} : memref<64x128xf32, #tpu.memory_space<vmem>>, vector<64x128xf32>,
    %c0_8 = arith.constant 0 : index
    %c0_9 = arith.constant 0 : index
    %9 = vector.load %arg9[%c0_8, %c0_9] : memref<64x128xf32, #tpu.memory_space<vmem>>, vector<64x128xf32>
    %c0_10 = arith.constant 0 : index
    %c0_11 = arith.constant 0 : index
    %10 = vector.load %arg3[%c0_10, %c0_11] : memref<64x128xbf16, #tpu.memory_space<vmem>>, vector<64x128xbf16>
    %cst_12 = arith.constant dense<0.000000e+00> : vector<64x128xf32>
    %11 = tpu.matmul %10, %3, %cst_12 {dimension_numbers = #tpu.dot_dimension_numbers<[1], [0], [0], [1], [0, 0, 1, 1], [], []>} : vector<64x128xbf16>, vector<128x128xbf16>, vector<64x128xf32> -> vector<64x128xf32>
    %12 = arith.addf %9, %11 : vector<64x128xf32>
    %c0_13 = arith.constant 0 : index
    %c0_14 = arith.constant 0 : index
    %13 = vector.load %arg9[%c0_13, %c0_14] : memref<64x128xf32, #tpu.memory_space<vmem>>, vector<64x128xf32>
    tpu.vector_store %arg9[%c0_13, %c0_14], %12 {strides = array<i32>} : memref<64x128xf32, #tpu.memory_space<vmem>>, vector<64x128xf32>,
    %c2_i32 = arith.constant 2 : i32
    %14 = arith.cmpi eq, %arg1, %c2_i32 : i32
    %15 = arith.extui %14 : i1 to i32
    %c0_i32_15 = arith.constant 0 : i32
    %16 = arith.cmpi ne, %15, %c0_i32_15 : i32
    scf.if %16 {
      %c0_16 = arith.constant 0 : index
      %c0_17 = arith.constant 0 : index
      %17 = vector.load %arg8[%c0_16, %c0_17] : memref<64x128xf32, #tpu.memory_space<vmem>>, vector<64x128xf32>
      %c0_18 = arith.constant 0 : index
      %c0_19 = arith.constant 0 : index
      %c0_20 = arith.constant 0 : index
      %18 = vector.load %arg5[%c0_18, %c0_19, %c0_20] : memref<2x128x128xf32, #tpu.memory_space<vmem>>, vector<1x128x128xf32>
      %19 = vector.shape_cast %18 : vector<1x128x128xf32> to vector<128x128xf32>
      %cst_21 = arith.constant dense<0.000000e+00> : vector<64x128xf32>
      %20 = tpu.matmul %17, %19, %cst_21 {dimension_numbers = #tpu.dot_dimension_numbers<[1], [0], [0], [1], [0, 0, 1, 1], [], []>} : vector<64x128xf32>, vector<128x128xf32>, vector<64x128xf32> -> vector<64x128xf32>
      %c0_22 = arith.constant 0 : index
      %c0_23 = arith.constant 0 : index
      %21 = vector.load %arg9[%c0_22, %c0_23] : memref<64x128xf32, #tpu.memory_space<vmem>>, vector<64x128xf32>
      %c1 = arith.constant 1 : index
      %c0_24 = arith.constant 0 : index
      %c0_25 = arith.constant 0 : index
      %22 = vector.load %arg5[%c1, %c0_24, %c0_25] : memref<2x128x128xf32, #tpu.memory_space<vmem>>, vector<1x128x128xf32>
      %23 = vector.shape_cast %22 : vector<1x128x128xf32> to vector<128x128xf32>
      %cst_26 = arith.constant dense<0.000000e+00> : vector<64x128xf32>
      %24 = tpu.matmul %21, %23, %cst_26 {dimension_numbers = #tpu.dot_dimension_numbers<[1], [0], [0], [1], [0, 0, 1, 1], [], []>} : vector<64x128xf32>, vector<128x128xf32>, vector<64x128xf32> -> vector<64x128xf32>
      %25 = arith.addf %20, %24 : vector<64x128xf32>
      %c0_27 = arith.constant 0 : index
      %c0_28 = arith.constant 0 : index
      %26 = vector.load %arg6[%c0_27, %c0_28] : memref<1x128xf32, #tpu.memory_space<vmem>>, vector<1x128xf32>
      %27 = vector.broadcast %26 : vector<1x128xf32> to vector<64x128xf32>
      %28 = arith.addf %25, %27 : vector<64x128xf32>
      %c0_29 = arith.constant 0 : index
      %c0_30 = arith.constant 0 : index
      %29 = vector.load %arg7[%c0_29, %c0_30] : memref<64x128xf32, #tpu.memory_space<vmem>>, vector<64x128xf32>
      tpu.vector_store %arg7[%c0_29, %c0_30], %28 {strides = array<i32>} : memref<64x128xf32, #tpu.memory_space<vmem>>, vector<64x128xf32>,
    } else {
    }
    return
  }
  func.func @transform_0(%arg0: i32, %arg1: i32) -> (i32, i32) {
    %c0_i32 = arith.constant 0 : i32
    return %arg0, %arg1 : i32, i32
  }
  func.func @transform_1(%arg0: i32, %arg1: i32) -> (i32, i32) {
    %c0_i32 = arith.constant 0 : i32
    return %arg0, %arg1 : i32, i32
  }
  func.func @transform_2(%arg0: i32, %arg1: i32) -> (i32, i32) {
    %c0_i32 = arith.constant 0 : i32
    %c0_i32_0 = arith.constant 0 : i32
    return %arg1, %c0_i32 : i32, i32
  }
  func.func @transform_3(%arg0: i32, %arg1: i32) -> (i32, i32, i32) {
    %c0_i32 = arith.constant 0 : i32
    %c0_i32_0 = arith.constant 0 : i32
    %c0_i32_1 = arith.constant 0 : i32
    %c0_i32_2 = arith.constant 0 : i32
    return %c0_i32, %c0_i32_0, %c0_i32_1 : i32, i32, i32
  }
  func.func @transform_4(%arg0: i32, %arg1: i32) -> (i32, i32) {
    %c0_i32 = arith.constant 0 : i32
    %c0_i32_0 = arith.constant 0 : i32
    %c0_i32_1 = arith.constant 0 : i32
    return %c0_i32, %c0_i32_0 : i32, i32
  }
  func.func @transform_5(%arg0: i32, %arg1: i32) -> (i32, i32) {
    %c0_i32 = arith.constant 0 : i32
    %c0_i32_0 = arith.constant 0 : i32
    return %arg0, %c0_i32 : i32, i32
  }
}

</mosaic_0001>

<bundles_post_ra>
// kernel: dirgcn_forward.1
= control target key start
LH: loop header
LB: loop body
LE: loop exit
PB: predicated region body
PF: predicated region fallthrough
CT: control target
= control target key end

     0   :  { %s1649_s18 = smov 0   ;;  %s1651_s19 = smov 0   ;;  %s1888_s0 = inlined_call_operand.vmem [shape: bf16[320,384], index: 0, kind: input, shape index: {}]   ;;  %s1889_s1 = inlined_call_operand.vmem [shape: bf16[320,384], index: 1, kind: input, shape index: {}]   ;;  %s1890_s2 = inlined_call_operand.vmem [shape: bf16[384,128], index: 2, kind: input, shape index: {}]   ;;  %s1891_s3 = inlined_call_operand.vmem [shape: f32[2,128,128], index: 3, kind: input, shape index: {}]   ;;  %s1892_s4 = inlined_call_operand.vmem [shape: f32[1,128], index: 4, kind: input, shape index: {}]   ;;  %s1893_s5 = inlined_call_operand.vmem [shape: f32[320,128], index: 5, kind: output, shape index: {}]  }
   0x1   :  { %s1653_s20 = smov 0   ;;  %s1655_s21 = smov 0  }
   0x2   :  { %s1657_s22 = smov 0   ;;  %s1659_s23 = smov 0  }
   0x3   :  { %s1661_s24 = smov 0  }
   0x4 LB: > { %s24_s25 = sadd.s32 1, %s1608_s22  ;;  %s27_s26 = sadd.s32 1, %s1612_s23  ;;  %s1616_s24 = sphi %s1661_s24, %s15_s24   ;;  %s1612_s23 = sphi %s1659_s23, %s1900_s23   ;;  %s1608_s22 = sphi %s1657_s22, %s1899_s22   ;;  %s1604_s21 = sphi %s1655_s21, %s1898_s21   ;;  %s1600_s20 = sphi %s1653_s20, %s1897_s20   ;;  %s1596_s19 = sphi %s1651_s19, %s1896_s19   ;;  %s1592_s18 = sphi %s1649_s18, %s1895_s18  }
   0x5   : > { %p25_p0 = scmp.ge.s32.totalorder %s24_s25, 3  ;;  %p43_p1 = scmp.ne.s32.totalorder %s1596_s19, %s1592_s18 }
   0x6   : > { %p44_p2 = scmp.eq.s32.totalorder %s1616_s24, 0  ;;  %s36_s6 = sadd.s32 1, %s1596_s19 }
   0x7   : > { %s1902_s25 = smov (%p25_p0, %s24_s25), 0  ;;  %s1904_s26 = smov (!%p25_p0, %s27_s26), %s1612_s23 }
   0x8   : > { %p1692_p3 = por %p44_p2, %p43_p1  ;;  %p29_p4 = scmp.ge.s32.totalorder %s1904_s26, 5 }
   0x9   : > { %s32_s28 = ssub.s32 %s1608_s22, %s1902_s25  ;;  %p1154_p6 = scmp.ge.s32.totalorder %s1616_s24, 15 }
   0xa   : > { %s1906_s26 = smov (%p29_p4, %s1904_s26), 0 }
   0xb   : > { %s31_s29 = ssub.s32 %s1612_s23, %s1906_s26  ;;  %197 = sbr.rel (%p1154_p6) target bundleno = 42 (0x2a), region = 24 }
   0xc   : > { %s33_s30 = sor.u32 %s32_s28, %s31_s29 }
   0xd   : > { %p34_p5 = scmp.eq.s32.totalorder %s33_s30, 0 }
   0xf   : > { %s1704_s7 = scalar_select %p34_p5, %s1596_s19, %s36_s6  }
  0x12   : > { %200 = sbr.rel (!%p1692_p3) target bundleno = 30 (0x1e), region = 28  ;;  %s202_s8 = sand.u32 (%p1692_p3), 1, %s1596_s19  }
  0x13   : > { %s1487_s9 = smul.u32 (%p1692_p3), 24, %s1612_s23  ;;  %s1155_s10 = sshll.u32 (%p1692_p3), %s202_s8, 5 }
  0x14   : > { %s204_s16 = scalar_lea.vmem (%p1692_p3), [#allocation4], %s1155_s10 }
  0x15   : > { %s207_s11 = sadd.s32 (%p1692_p3), %s1608_s22, %s1487_s9 }
  0x16   : > { %s1158_s12 = sshll.u32 (%p1692_p3), %s207_s11, 2 }
  0x17   : > { %s209_s15 = scalar_lea.vmem (%p1692_p3), %s1888_s0, %s1158_s12 }
  0x18   : > { %v225_v0 = vld [vmem:[%s209_s15] sm:$0xf] (%p1692_p3)  ;;  %v227_v1 = vld [vmem:[%s209_s15 + $0xc] sm:$0xf] (%p1692_p3)  ;;  %v229_v2 = vld [vmem:[%s209_s15 + $0x18] sm:$0xf] (%p1692_p3) }
  0x19   : > { %226 = vst [vmem:[%s204_s16] sm:$0xf] %v225_v0  ;;  %228 = vst [vmem:[%s204_s16 + $0x4] sm:$0xf] %v227_v1  ;;  %v231_v3 = vld [vmem:[%s209_s15 + $0x24] sm:$0xf] }
  0x1a   : > { %230 = vst [vmem:[%s204_s16 + $0x8] sm:$0xf] %v229_v2  ;;  %v233_v4 = vld [vmem:[%s209_s15 + $0x30] sm:$0xf]  ;;  %v235_v5 = vld [vmem:[%s209_s15 + $0x3c] sm:$0xf] }
  0x1b   : > { %232 = vst [vmem:[%s204_s16 + $0xc] sm:$0xf] %v231_v3  ;;  %234 = vst [vmem:[%s204_s16 + $0x10] sm:$0xf] %v233_v4  ;;  %v237_v6 = vld [vmem:[%s209_s15 + $0x48] sm:$0xf] }
  0x1c   : > { %236 = vst [vmem:[%s204_s16 + $0x14] sm:$0xf] %v235_v5  ;;  %v239_v7 = vld [vmem:[%s209_s15 + $0x54] sm:$0xf]  ;;  %238 = vst [vmem:[%s204_s16 + $0x18] sm:$0xf] %v237_v6 }
  0x1d   : > { %240 = vst [vmem:[%s204_s16 + $0x1c] sm:$0xf] %v239_v7 }
  0x1e PF: > { %279 = sbr.rel (!%p1692_p3) target bundleno = 42 (0x2a), region = 69  ;;  %s281_s17 = sand.u32 (%p1692_p3), 1, %s1596_s19  }
  0x1f   : > { %s1488_s28 = smul.u32 (%p1692_p3), 24, %s1612_s23  ;;  %s1159_s29 = sshll.u32 (%p1692_p3), %s281_s17, 5 }
  0x20   : > { %s283_s11 = scalar_lea.vmem (%p1692_p3), [#allocation5], %s1159_s29 }
  0x21   : > { %s286_s30 = sadd.s32 (%p1692_p3), %s1608_s22, %s1488_s28 }
  0x22   : > { %s1162_s6 = sshll.u32 (%p1692_p3), %s286_s30, 2 }
  0x23   : > { %s288_s10 = scalar_lea.vmem (%p1692_p3), %s1889_s1, %s1162_s6 }
  0x24   : > { %v304_v8 = vld [vmem:[%s288_s10] sm:$0xf] (%p1692_p3)  ;;  %v306_v9 = vld [vmem:[%s288_s10 + $0xc] sm:$0xf] (%p1692_p3)  ;;  %v308_v10 = vld [vmem:[%s288_s10 + $0x18] sm:$0xf] (%p1692_p3) }
  0x25   : > { %305 = vst [vmem:[%s283_s11] sm:$0xf] %v304_v8  ;;  %307 = vst [vmem:[%s283_s11 + $0x4] sm:$0xf] %v306_v9  ;;  %v310_v11 = vld [vmem:[%s288_s10 + $0x24] sm:$0xf] }
  0x26   : > { %309 = vst [vmem:[%s283_s11 + $0x8] sm:$0xf] %v308_v10  ;;  %v312_v12 = vld [vmem:[%s288_s10 + $0x30] sm:$0xf]  ;;  %v314_v13 = vld [vmem:[%s288_s10 + $0x3c] sm:$0xf] }
  0x27   : > { %311 = vst [vmem:[%s283_s11 + $0xc] sm:$0xf] %v310_v11  ;;  %313 = vst [vmem:[%s283_s11 + $0x10] sm:$0xf] %v312_v12  ;;  %v316_v14 = vld [vmem:[%s288_s10 + $0x48] sm:$0xf] }
  0x28   : > { %315 = vst [vmem:[%s283_s11 + $0x14] sm:$0xf] %v314_v13  ;;  %v318_v15 = vld [vmem:[%s288_s10 + $0x54] sm:$0xf]  ;;  %317 = vst [vmem:[%s283_s11 + $0x18] sm:$0xf] %v316_v14 }
  0x29   : > { %319 = vst [vmem:[%s283_s11 + $0x1c] sm:$0xf] %v318_v15 }
  0x2a PF: > { %p1163_p7 = scmp.ge.s32.totalorder %s1616_s24, 1  ;;  %p366_p8 = scmp.lt.s32.totalorder %s1616_s24, 16 }
  0x2c   : > { %p367_p9 = pnand %p1163_p7, %p366_p8 }
  0x2d   : > { %s373_s27 = sand.u32 (!%p367_p9), 1, %s1592_s18   ;;  %s1166_s12 = sshll.u32 (!%p367_p9), %s1600_s20, 4 }
  0x2e   : > { %370 = sbr.rel (%p367_p9) target bundleno = 566 (0x236), region = 114  ;;  %s1164_s13 = sshll.u32 (!%p367_p9), %s373_s27, 5 }
  0x2f   : > { %p419_p10 = scmp.lt.s32.totalorder (!%p367_p9), %s1166_s12, 47  ;;  %s1168_s14 = sshll.u32 (!%p367_p9), %s1604_s21, 3 }
  0x30   : > { %p425_p11 = scmp.lt.s32.totalorder (!%p367_p9), %s1168_s14, 39  ;;  %s1738_s18 = scalar_lea.vmem (!%p367_p9), [#allocation4], %s1164_s13 }
  0x31   : > { %s1740_s9 = scalar_lea.vmem (!%p367_p9), [#allocation5], %s1164_s13  ;;  %p1170_p12 = scmp.ne.s32.totalorder (!%p367_p9), %s1600_s20, 0 }
  0x35   : > { %s1908_s12 = smov (!%p419_p10, %s1166_s12), 47  ;;  %s1910_s14 = smov (!%p425_p11, %s1168_s14), 39 }
  0x36   : > { %s1167_s15 = sshll.u32 %s1908_s12, 2  ;;  %s1169_s29 = sshll.u32 %s1910_s14, 3  ;;  %v1618_v16 = vmov (!%p1170_p12), 0.0  }
  0x37   : > { %s1731_s28 = scalar_lea.vmem %s1890_s2, %s1167_s15  ;;  %s1736_s8 = scalar_lea.vmem %s1893_s5, %s1169_s29  ;;  %435 = vst [vmem:[#allocation2] sm:$0xff] (!%p1170_p12), %v1618_v16  ;;  %436 = vst [vmem:[#allocation2 + $0x8] sm:$0xff] (!%p1170_p12), %v1618_v16 }
  0x38   : > { %434 = sbr.rel (%p1170_p12) target bundleno = 63 (0x3f), region = 126  ;;  %437 = vst [vmem:[#allocation2 + $0x10] sm:$0xff] (!%p1170_p12), %v1618_v16  ;;  %438 = vst [vmem:[#allocation2 + $0x18] sm:$0xff] (!%p1170_p12), %v1618_v16 }
  0x39   : > { %439 = vst [vmem:[#allocation2 + $0x20] sm:$0xff] (!%p1170_p12), %v1618_v16  ;;  %440 = vst [vmem:[#allocation2 + $0x28] sm:$0xff] (!%p1170_p12), %v1618_v16 }
  0x3a   : > { %441 = vst [vmem:[#allocation2 + $0x30] sm:$0xff] (!%p1170_p12), %v1618_v16  ;;  %442 = vst [vmem:[#allocation2 + $0x38] sm:$0xff] (!%p1170_p12), %v1618_v16 }
  0x3b   : > { %443 = vst [vmem:[#allocation3] sm:$0xff] (!%p1170_p12), %v1618_v16  ;;  %444 = vst [vmem:[#allocation3 + $0x8] sm:$0xff] (!%p1170_p12), %v1618_v16 }
  0x3c   : > { %445 = vst [vmem:[#allocation3 + $0x10] sm:$0xff] (!%p1170_p12), %v1618_v16  ;;  %446 = vst [vmem:[#allocation3 + $0x18] sm:$0xff] (!%p1170_p12), %v1618_v16 }
  0x3d   : > { %447 = vst [vmem:[#allocation3 + $0x20] sm:$0xff] (!%p1170_p12), %v1618_v16  ;;  %448 = vst [vmem:[#allocation3 + $0x28] sm:$0xff] (!%p1170_p12), %v1618_v16 }
  0x3e   : > { %449 = vst [vmem:[#allocation3 + $0x30] sm:$0xff] (!%p1170_p12), %v1618_v16  ;;  %450 = vst [vmem:[#allocation3 + $0x38] sm:$0xff] (!%p1170_p12), %v1618_v16 }
  0x3f PF: > { %v1546_v17 = vld [vmem:[%s1731_s28] sm:$0xff]   ;;  %v1547_v18 = vld [vmem:[%s1731_s28 + $0x8] sm:$0xff]   ;;  %v1548_v19 = vld [vmem:[%s1731_s28 + $0x10] sm:$0xff]   ;;  %p1187_p13 = scmp.ne.s32.totalorder %s1600_s20, 2 }
  0x40   : > { %1279 = vmatprep.subr.bf16.mxu0 %v1546_v17  ;;  %1303 = vmatprep.subr.bf16.mxu1 %v1546_v17  ;;  %v1549_v20 = vld [vmem:[%s1731_s28 + $0x18] sm:$0xff]   ;;  %v1554_v21 = vld [vmem:[%s1738_s18] sm:$0xff]   ;;  %v1551_v24 = vld [vmem:[%s1731_s28 + $0x28] sm:$0xff]  }
  0x41   : > { %1280 = vmatpush3.bf16.msra.mxu0 %v1546_v17  ;;  %1304 = vmatpush3.bf16.msra.mxu1 %v1546_v17  ;;  %v1555_v22 = vld [vmem:[%s1740_s9] sm:$0xff]   ;;  %v1552_v25 = vld [vmem:[%s1731_s28 + $0x30] sm:$0xff]   ;;  %v1553_v26 = vld [vmem:[%s1731_s28 + $0x38] sm:$0xff]  }
  0x42   : > { %1281 = vmatprep.subr.bf16.mxu0 %v1547_v18  ;;  %1305 = vmatprep.subr.bf16.mxu1 %v1547_v18  ;;  %v1550_v23 = vld [vmem:[%s1731_s28 + $0x20] sm:$0xff]   ;;  %v1556_v27 = vld [vmem:[%s1738_s18 + $0x8] sm:$0xff]   ;;  %v1558_v29 = vld [vmem:[%s1738_s18 + $0x10] sm:$0xff]  }
  0x43   : > { %1295 = vmatprep.mubr.bf16.mxu0 %v1554_v21  ;;  %1319 = vmatprep.mubr.bf16.mxu1 %v1555_v22  ;;  %v1557_v28 = vld [vmem:[%s1740_s9 + $0x8] sm:$0xff]   ;;  %v1559_v30 = vld [vmem:[%s1740_s9 + $0x10] sm:$0xff]   ;;  %v1560_v31 = vld [vmem:[%s1738_s18 + $0x18] sm:$0xff]  }
  0x44   : > { %v1561_v32 = vld [vmem:[%s1740_s9 + $0x18] sm:$0xff]   ;;  %v469_v33 = vld [vmem:[#allocation2 + $0x10] sm:$0xff]  ;;  %v467_v35 = vld [vmem:[#allocation2] sm:$0xff] }
  0x45   : > { %1282 = vmatpush3.bf16.msra.mxu0 %v1547_v18  ;;  %1306 = vmatpush3.bf16.msra.mxu1 %v1547_v18  ;;  %v638_v34 = vld [vmem:[#allocation3 + $0x10] sm:$0xff]  ;;  %v636_v36 = vld [vmem:[#allocation3] sm:$0xff]  ;;  %v470_v39 = vld [vmem:[#allocation2 + $0x18] sm:$0xff] }
  0x46   : > { %1283 = vmatprep.subr.bf16.mxu0 %v1548_v19  ;;  %1307 = vmatprep.subr.bf16.mxu1 %v1548_v19  ;;  %v639_v40 = vld [vmem:[#allocation3 + $0x18] sm:$0xff]  ;;  %v468_v45 = vld [vmem:[#allocation2 + $0x8] sm:$0xff]  ;;  %v473_v57 = vld [vmem:[#allocation2 + $0x30] sm:$0xff] }
  0x47   : > { %v637_v46 = vld [vmem:[#allocation3 + $0x8] sm:$0xff]  ;;  %v642_v58 = vld [vmem:[#allocation3 + $0x30] sm:$0xff]  ;;  %v471_v59 = vld [vmem:[#allocation2 + $0x20] sm:$0xff] }
  0x48   : > { %v640_v60 = vld [vmem:[#allocation3 + $0x20] sm:$0xff]  ;;  %v474_v63 = vld [vmem:[#allocation2 + $0x38] sm:$0xff]  ;;  %v472_v5 = vld [vmem:[#allocation2 + $0x28] sm:$0xff] }
  0x49   : > { %1284 = vmatpush3.bf16.msra.mxu0 %v1548_v19  ;;  %1308 = vmatpush3.bf16.msra.mxu1 %v1548_v19  ;;  %v643_v0 = vld [vmem:[#allocation3 + $0x38] sm:$0xff]  ;;  %v641_v6 = vld [vmem:[#allocation3 + $0x28] sm:$0xff]  ;;  %v1188_v17 = vld [vmem:[%s1891_s3 + $0x80] sm:$0xff] (!%p1187_p13) }
  0x4a   : > { %1285 = vmatprep.subr.bf16.mxu0 %v1549_v20  ;;  %1309 = vmatprep.subr.bf16.mxu1 %v1549_v20  ;;  %v1189_v18 = vld [vmem:[%s1891_s3 + $0x88] sm:$0xff] (!%p1187_p13)  ;;  %v769_v19 = vld [vmem:[%s1891_s3] sm:$0xff] (!%p1187_p13)  ;;  %v1190_v22 = vld [vmem:[%s1891_s3 + $0x90] sm:$0xff] (!%p1187_p13) }
  0x4b   : > { %v770_v21 = vld [vmem:[%s1891_s3 + $0x8] sm:$0xff] (!%p1187_p13) }
  0x4d   : > { %1286 = vmatpush3.bf16.msra.mxu0 %v1549_v20  ;;  %1310 = vmatpush3.bf16.msra.mxu1 %v1549_v20  ;;  %v1415_v20 = vpack.c.bf16 (!%p1187_p13), %v1189_v18, %v1188_v17 }
  0x4e   : > { %1287 = vmatprep.subr.bf16.mxu0 %v1550_v23  ;;  %1311 = vmatprep.subr.bf16.mxu1 %v1550_v23 }
  0x51   : > { %1288 = vmatpush3.bf16.msra.mxu0 %v1550_v23  ;;  %1312 = vmatpush3.bf16.msra.mxu1 %v1550_v23  ;;  %v1191_v23 = vld [vmem:[%s1891_s3 + $0x98] sm:$0xff] (!%p1187_p13) }
  0x52   : > { %1289 = vmatprep.subr.bf16.mxu0 %v1551_v24  ;;  %1313 = vmatprep.subr.bf16.mxu1 %v1551_v24 }
  0x55   : > { %1290 = vmatpush3.bf16.msra.mxu0 %v1551_v24  ;;  %1314 = vmatpush3.bf16.msra.mxu1 %v1551_v24  ;;  %v1447_v24 = vpack.c.bf16 (!%p1187_p13), %v770_v21, %v769_v19  ;;  %v1204_v19 = vld [vmem:[%s1892_s4] ss:$0 sm:$0xff] (!%p1187_p13) }
  0x56   : > { %1291 = vmatprep.subr.bf16.mxu0 %v1552_v25  ;;  %1315 = vmatprep.subr.bf16.mxu1 %v1552_v25 }
  0x59   : > { %1292 = vmatpush3.bf16.msra.mxu0 %v1552_v25  ;;  %1316 = vmatpush3.bf16.msra.mxu1 %v1552_v25  ;;  %v1419_v25 = vpack.c.bf16 (!%p1187_p13), %v1191_v23, %v1190_v22 }
  0x5a   : > { %1293 = vmatprep.subr.bf16.mxu0 %v1553_v26  ;;  %1317 = vmatprep.subr.bf16.mxu1 %v1553_v26 }
  0x5d   : > { %1294 = vmatpush3.bf16.msra.mxu0 %v1553_v26  ;;  %1318 = vmatpush3.bf16.msra.mxu1 %v1553_v26  ;;  %v771_v26 = vld [vmem:[%s1891_s3 + $0x10] sm:$0xff] (!%p1187_p13) }
  0x5e   : > { %1416 = vmatprep.subr.bf16.mxu1 (!%p1187_p13), %v1415_v20  ;;  %1448 = vmatprep.subr.bf16.mxu0 (!%p1187_p13), %v1447_v24 }
  0x60   : > { %1296 = vmatmul.mubr.bf16.vlgmr.msra.gmra.mrb[0].mxu0 %v1556_v27  ;;  %1320 = vmatmul.mubr.bf16.vlgmr.msra.gmra.mrb[0].mxu1 %v1557_v28  ;;  %v772_v27 = vld [vmem:[%s1891_s3 + $0x18] sm:$0xff] (!%p1187_p13)  ;;  %v1192_v28 = vld [vmem:[%s1891_s3 + $0xa0] sm:$0xff] (!%p1187_p13) }
  0x61   : > { %1299 = vmatprep.mubr.bf16.mxu0 %v1558_v29  ;;  %1323 = vmatprep.mubr.bf16.mxu1 %v1559_v30  ;;  %v1451_v29 = vpack.c.bf16 (!%p1187_p13), %v772_v27, %v771_v26  ;;  %v1193_v30 = vld [vmem:[%s1891_s3 + $0xa8] sm:$0xff] (!%p1187_p13) }
  0x62   : > { %1418 = vmatpush3.bf16.msra.mxu1 (!%p1187_p13), %v1415_v20  ;;  %1450 = vmatpush3.bf16.msra.mxu0 (!%p1187_p13), %v1447_v24 }
  0x63   : > { %1420 = vmatprep.subr.bf16.mxu1 (!%p1187_p13), %v1419_v25  ;;  %1452 = vmatprep.subr.bf16.mxu0 (!%p1187_p13), %v1451_v29 }
  0x66   : > { %1422 = vmatpush3.bf16.msra.mxu1 (!%p1187_p13), %v1419_v25  ;;  %1454 = vmatpush3.bf16.msra.mxu0 (!%p1187_p13), %v1451_v29 }
  0x68   : > { %1300 = vmatmul.mubr.bf16.gmra.mrb[4].mxu0 %v1560_v31  ;;  %1324 = vmatmul.mubr.bf16.gmra.mrb[4].mxu1 %v1561_v32  ;;  %v773_v31 = vld [vmem:[%s1891_s3 + $0x20] sm:$0xff] (!%p1187_p13)  ;;  %v774_v32 = vld [vmem:[%s1891_s3 + $0x28] sm:$0xff] (!%p1187_p13) }
 0x133   : > { %v1297_v37 = vpop.f32.mrb[0].mxu0  ;;  %v1321_v38 = vpop.f32.mrb[0].mxu1 }
 0x134   : > { %v622_v41 = vadd.f32 %v1297_v37, %v469_v33  ;;  %v743_v42 = vadd.f32 %v1321_v38, %v638_v34  ;;  %v589_v43 = vpop.f32.mrb[1].mxu0  ;;  %v710_v44 = vpop.f32.mrb[1].mxu1  ;;  %v1423_v33 = vpack.c.bf16 (!%p1187_p13), %v1193_v30, %v1192_v28  ;;  %v1455_v34 = vpack.c.bf16 (!%p1187_p13), %v774_v32, %v773_v31  ;;  %v775_v37 = vld [vmem:[%s1891_s3 + $0x30] sm:$0xff] (!%p1187_p13)  ;;  %v776_v38 = vld [vmem:[%s1891_s3 + $0x38] sm:$0xff] (!%p1187_p13) }
 0x135   : > { %v620_v47 = vadd.f32 %v589_v43, %v467_v35  ;;  %v741_v48 = vadd.f32 %v710_v44, %v636_v36  ;;  %v1298_v49 = vpop.f32.mrb[2].mxu0  ;;  %v1322_v50 = vpop.f32.mrb[2].mxu1  ;;  %v1194_v35 = vld [vmem:[%s1891_s3 + $0xb0] sm:$0xff] (!%p1187_p13)  ;;  %v1195_v36 = vld [vmem:[%s1891_s3 + $0xb8] sm:$0xff] (!%p1187_p13)  ;;  %v777_v44 = vld [vmem:[%s1891_s3 + $0x40] sm:$0xff] (!%p1187_p13) }
 0x136   : > { %630 = vst [vmem:[#allocation2 + $0x10] sm:$0xff] %v622_v41  ;;  %751 = vst [vmem:[#allocation3 + $0x10] sm:$0xff] %v743_v42  ;;  %v623_v51 = vadd.f32 %v1298_v49, %v470_v39  ;;  %v744_v52 = vadd.f32 %v1322_v50, %v639_v40  ;;  %v592_v53 = vpop.f32.mrb[3].mxu0  ;;  %v713_v54 = vpop.f32.mrb[3].mxu1  ;;  %1424 = vmatprep.subr.bf16.mxu1 (!%p1187_p13), %v1423_v33  ;;  %v1427_v39 = vpack.c.bf16 (!%p1187_p13), %v1195_v36, %v1194_v35  ;;  %v1196_v41 = vld [vmem:[%s1891_s3 + $0xc0] sm:$0xff] (!%p1187_p13)  ;;  %v1197_v42 = vld [vmem:[%s1891_s3 + $0xc8] sm:$0xff] (!%p1187_p13) }
 0x137   : > { %628 = vst [vmem:[#allocation2] sm:$0xff] %v620_v47  ;;  %749 = vst [vmem:[#allocation3] sm:$0xff] %v741_v48  ;;  %v621_v55 = vadd.f32 %v592_v53, %v468_v45  ;;  %v742_v56 = vadd.f32 %v713_v54, %v637_v46  ;;  %1456 = vmatprep.subr.bf16.mxu0 (!%p1187_p13), %v1455_v34  ;;  %v1459_v40 = vpack.c.bf16 (!%p1187_p13), %v776_v38, %v775_v37  ;;  %v778_v45 = vld [vmem:[%s1891_s3 + $0x48] sm:$0xff] (!%p1187_p13)  ;;  %v1198_v49 = vld [vmem:[%s1891_s3 + $0xd0] sm:$0xff] (!%p1187_p13) }
 0x138   : > { %631 = vst [vmem:[#allocation2 + $0x18] sm:$0xff] %v623_v51  ;;  %752 = vst [vmem:[#allocation3 + $0x18] sm:$0xff] %v744_v52  ;;  %1426 = vmatpush3.bf16.msra.mxu1 (!%p1187_p13), %v1423_v33  ;;  %1458 = vmatpush3.bf16.msra.mxu0 (!%p1187_p13), %v1455_v34  ;;  %v1431_v47 = vpack.c.bf16 (!%p1187_p13), %v1197_v42, %v1196_v41  ;;  %v1463_v48 = vpack.c.bf16 (!%p1187_p13), %v778_v45, %v777_v44  ;;  %v1199_v50 = vld [vmem:[%s1891_s3 + $0xd8] sm:$0xff] (!%p1187_p13)  ;;  %v779_v51 = vld [vmem:[%s1891_s3 + $0x50] sm:$0xff] (!%p1187_p13) }
 0x139   : > { %629 = vst [vmem:[#allocation2 + $0x8] sm:$0xff] %v621_v55  ;;  %750 = vst [vmem:[#allocation3 + $0x8] sm:$0xff] %v742_v56  ;;  %1428 = vmatprep.subr.bf16.mxu1 (!%p1187_p13), %v1427_v39  ;;  %1460 = vmatprep.subr.bf16.mxu0 (!%p1187_p13), %v1459_v40  ;;  %v780_v52 = vld [vmem:[%s1891_s3 + $0x58] sm:$0xff] (!%p1187_p13)  ;;  %v1435_v53 = vpack.c.bf16 (!%p1187_p13), %v1199_v50, %v1198_v49  ;;  %v1200_v55 = vld [vmem:[%s1891_s3 + $0xe0] sm:$0xff] (!%p1187_p13) }
 0x13a   : > { %v1467_v54 = vpack.c.bf16 (!%p1187_p13), %v780_v52, %v779_v51  ;;  %v1201_v56 = vld [vmem:[%s1891_s3 + $0xe8] sm:$0xff] (!%p1187_p13) }
 0x13b   : > { %v1301_v61 = vpop.f32.mrb[4].mxu0  ;;  %v1325_v62 = vpop.f32.mrb[4].mxu1  ;;  %760 = sbr.rel (%p1187_p13) target bundleno = 566 (0x236), region = 130 }
 0x13c   : > { %v626_v1 = vadd.f32 %v1301_v61, %v473_v57  ;;  %v747_v2 = vadd.f32 %v1325_v62, %v642_v58  ;;  %v605_v3 = vpop.f32.mrb[5].mxu0  ;;  %v726_v4 = vpop.f32.mrb[5].mxu1  ;;  %1430 = vmatpush3.bf16.msra.mxu1 (!%p1187_p13), %v1427_v39  ;;  %1462 = vmatpush3.bf16.msra.mxu0 (!%p1187_p13), %v1459_v40  ;;  %v781_v57 = vld [vmem:[%s1891_s3 + $0x60] sm:$0xff] (!%p1187_p13)  ;;  %v782_v58 = vld [vmem:[%s1891_s3 + $0x68] sm:$0xff] (!%p1187_p13)  ;;  %v1202_v61 = vld [vmem:[%s1891_s3 + $0xf0] sm:$0xff] (!%p1187_p13) }
 0x13d   : > { %v624_v7 = vadd.f32 %v605_v3, %v471_v59  ;;  %v745_v8 = vadd.f32 %v726_v4, %v640_v60  ;;  %v1302_v9 = vpop.f32.mrb[6].mxu0  ;;  %v1326_v10 = vpop.f32.mrb[6].mxu1  ;;  %1432 = vmatprep.subr.bf16.mxu1 (!%p1187_p13), %v1431_v47  ;;  %1464 = vmatprep.subr.bf16.mxu0 (!%p1187_p13), %v1463_v48  ;;  %v1439_v59 = vpack.c.bf16 (!%p1187_p13), %v1201_v56, %v1200_v55  ;;  %v1203_v62 = vld [vmem:[%s1891_s3 + $0xf8] sm:$0xff] (!%p1187_p13) }
 0x13e   : > { %634 = vst [vmem:[#allocation2 + $0x30] sm:$0xff] %v626_v1  ;;  %755 = vst [vmem:[#allocation3 + $0x30] sm:$0xff] %v747_v2  ;;  %v627_v11 = vadd.f32 %v1302_v9, %v474_v63  ;;  %v748_v12 = vadd.f32 %v1326_v10, %v643_v0  ;;  %v608_v13 = vpop.f32.mrb[7].mxu0  ;;  %v729_v14 = vpop.f32.mrb[7].mxu1  ;;  %v785_v43 = vld [vmem:[#allocation3] sm:$0xff] (!%p1187_p13)  ;;  %v1471_v60 = vpack.c.bf16 (!%p1187_p13), %v782_v58, %v781_v57  ;;  %v783_v63 = vld [vmem:[%s1891_s3 + $0x70] sm:$0xff] (!%p1187_p13) }
 0x13f   : > { %632 = vst [vmem:[#allocation2 + $0x20] sm:$0xff] %v624_v7  ;;  %753 = vst [vmem:[#allocation3 + $0x20] sm:$0xff] %v745_v8  ;;  %v625_v15 = vadd.f32 %v608_v13, %v472_v5  ;;  %v746_v16 = vadd.f32 %v729_v14, %v641_v6  ;;  %1359 = vmatprep.mubr.f32.mxu1 (!%p1187_p13), %v785_v43  ;;  %v761_v46 = vld [vmem:[#allocation2] sm:$0xff] (!%p1187_p13)  ;;  %v784_v0 = vld [vmem:[%s1891_s3 + $0x78] sm:$0xff] (!%p1187_p13)  ;;  %v1443_v1 = vpack.c.bf16 (!%p1187_p13), %v1203_v62, %v1202_v61 }
 0x140   : > { %635 = vst [vmem:[#allocation2 + $0x38] sm:$0xff] %v627_v11  ;;  %756 = vst [vmem:[#allocation3 + $0x38] sm:$0xff] %v748_v12  ;;  %1403 = vmatprep.mubr.f32.mxu0 (!%p1187_p13), %v761_v46  ;;  %1434 = vmatpush3.bf16.msra.mxu1 (!%p1187_p13), %v1431_v47  ;;  %v1475_v2 = vpack.c.bf16 (!%p1187_p13), %v784_v0, %v783_v63  ;;  %v786_v3 = vld [vmem:[#allocation3 + $0x8] sm:$0xff] (!%p1187_p13)  ;;  %v787_v5 = vld [vmem:[#allocation3 + $0x10] sm:$0xff] (!%p1187_p13) }
 0x141   : > { %633 = vst [vmem:[#allocation2 + $0x28] sm:$0xff] %v625_v15  ;;  %754 = vst [vmem:[#allocation3 + $0x28] sm:$0xff] %v746_v16  ;;  %1466 = vmatpush3.bf16.msra.mxu0 (!%p1187_p13), %v1463_v48  ;;  %1436 = vmatprep.subr.bf16.mxu1 (!%p1187_p13), %v1435_v53  ;;  %v762_v4 = vld [vmem:[#allocation2 + $0x8] sm:$0xff] (!%p1187_p13)  ;;  %v763_v6 = vld [vmem:[#allocation2 + $0x10] sm:$0xff] (!%p1187_p13) }
 0x142   : > { %1468 = vmatprep.subr.bf16.mxu0 %v1467_v54  ;;  %v788_v7 = vld [vmem:[#allocation3 + $0x18] sm:$0xff] }
 0x143   : > { %v764_v8 = vld [vmem:[#allocation2 + $0x18] sm:$0xff] }
 0x144   : > { %1438 = vmatpush3.bf16.msra.mxu1 %v1435_v53 }
 0x145   : > { %1470 = vmatpush3.bf16.msra.mxu0 %v1467_v54  ;;  %1440 = vmatprep.subr.bf16.mxu1 %v1439_v59  ;;  %v791_v13 = vld [vmem:[#allocation3 + $0x30] sm:$0xff] }
 0x146   : > { %1472 = vmatprep.subr.bf16.mxu0 %v1471_v60  ;;  %v789_v9 = vld [vmem:[#allocation3 + $0x20] sm:$0xff]  ;;  %v767_v14 = vld [vmem:[#allocation2 + $0x30] sm:$0xff] }
 0x147   : > { %v765_v10 = vld [vmem:[#allocation2 + $0x20] sm:$0xff]  ;;  %v792_v15 = vld [vmem:[#allocation3 + $0x38] sm:$0xff] }
 0x148   : > { %1442 = vmatpush3.bf16.msra.mxu1 %v1439_v59  ;;  %v790_v11 = vld [vmem:[#allocation3 + $0x28] sm:$0xff]  ;;  %v768_v16 = vld [vmem:[#allocation2 + $0x38] sm:$0xff] }
 0x149   : > { %1474 = vmatpush3.bf16.msra.mxu0 %v1471_v60  ;;  %1444 = vmatprep.subr.bf16.mxu1 %v1443_v1  ;;  %v766_v12 = vld [vmem:[#allocation2 + $0x28] sm:$0xff] }
 0x14a   : > { %1476 = vmatprep.subr.bf16.mxu0 %v1475_v2 }
 0x14c   : > { %1446 = vmatpush3.bf16.msra.mxu1 %v1443_v1 }
 0x14d   : > { %1478 = vmatpush3.bf16.msra.mxu0 %v1475_v2 }
 0x14f   : > { %1360 = vmatmul.mubr.f32.vlgmr.msra.gmra.mrb[0].mxu1 %v786_v3 }
 0x150   : > { %1404 = vmatmul.mubr.f32.vlgmr.msra.gmra.mrb[0].mxu0 %v762_v4  ;;  %1362 = vmatprep.mubr.f32.mxu1 %v787_v5 }
 0x151   : > { %1406 = vmatprep.mubr.f32.mxu0 %v763_v6 }
 0x153   : > { %1363 = vmatmul.mubr.f32.gmra.mrb[2].mxu1 %v788_v7 }
 0x154   : > { %1407 = vmatmul.mubr.f32.gmra.mrb[2].mxu0 %v764_v8  ;;  %1365 = vmatprep.mubr.f32.mxu1 %v789_v9 }
 0x155   : > { %1409 = vmatprep.mubr.f32.mxu0 %v765_v10 }
 0x157   : > { %1366 = vmatmul.mubr.f32.gmra.mrb[4].mxu1 %v790_v11 }
 0x158   : > { %1410 = vmatmul.mubr.f32.gmra.mrb[4].mxu0 %v766_v12  ;;  %1368 = vmatprep.mubr.f32.mxu1 %v791_v13 }
 0x159   : > { %1412 = vmatprep.mubr.f32.mxu0 %v767_v14 }
 0x15b   : > { %1369 = vmatmul.mubr.f32.gmra.mrb[6].mxu1 %v792_v15 }
 0x15c   : > { %1413 = vmatmul.mubr.f32.gmra.mrb[6].mxu0 %v768_v16 }
 0x222   : > { %v1361_v17 = vpop.f32.mrb[0].mxu1 }
 0x223   : > { %v1405_v18 = vpop.f32.mrb[0].mxu0  ;;  %v876_v20 = vpop.f32.mrb[1].mxu1 }
 0x224   : > { %v987_v21 = vadd.f32 %v1405_v18, %v1361_v17  ;;  %v981_v22 = vpop.f32.mrb[1].mxu0 }
 0x225   : > { %v982_v23 = vadd.f32 %v981_v22, %v876_v20 }
 0x226   : > { %v1028_v24 = vadd.f32 %v1204_v19, %v987_v21  ;;  %v1364_v25 = vpop.f32.mrb[2].mxu1 }
 0x227   : > { %v1027_v26 = vadd.f32 %v1204_v19, %v982_v23  ;;  %v1408_v27 = vpop.f32.mrb[2].mxu0  ;;  %v886_v28 = vpop.f32.mrb[3].mxu1 }
 0x228   : > { %1036 = vst [vmem:[%s1736_s8 + $0x8] sm:$0xff] %v1028_v24  ;;  %v997_v29 = vadd.f32 %v1408_v27, %v1364_v25  ;;  %v991_v30 = vpop.f32.mrb[3].mxu0 }
 0x229   : > { %1035 = vst [vmem:[%s1736_s8] sm:$0xff] %v1027_v26  ;;  %v992_v31 = vadd.f32 %v991_v30, %v886_v28 }
 0x22a   : > { %v1030_v32 = vadd.f32 %v1204_v19, %v997_v29  ;;  %v1367_v33 = vpop.f32.mrb[4].mxu1 }
 0x22b   : > { %v1029_v34 = vadd.f32 %v1204_v19, %v992_v31  ;;  %v1411_v35 = vpop.f32.mrb[4].mxu0  ;;  %v896_v36 = vpop.f32.mrb[5].mxu1 }
 0x22c   : > { %1038 = vst [vmem:[%s1736_s8 + $0x18] sm:$0xff] %v1030_v32  ;;  %v1007_v37 = vadd.f32 %v1411_v35, %v1367_v33  ;;  %v1001_v38 = vpop.f32.mrb[5].mxu0 }
 0x22d   : > { %1037 = vst [vmem:[%s1736_s8 + $0x10] sm:$0xff] %v1029_v34  ;;  %v1002_v39 = vadd.f32 %v1001_v38, %v896_v36 }
 0x22e   : > { %v1032_v40 = vadd.f32 %v1204_v19, %v1007_v37  ;;  %v1370_v41 = vpop.f32.mrb[6].mxu1 }
 0x22f   : > { %v1031_v42 = vadd.f32 %v1204_v19, %v1002_v39  ;;  %v1414_v43 = vpop.f32.mrb[6].mxu0  ;;  %v906_v44 = vpop.f32.mrb[7].mxu1 }
 0x230   : > { %1040 = vst [vmem:[%s1736_s8 + $0x28] sm:$0xff] %v1032_v40  ;;  %v1017_v45 = vadd.f32 %v1414_v43, %v1370_v41  ;;  %v1011_v46 = vpop.f32.mrb[7].mxu0 }
 0x231   : > { %1039 = vst [vmem:[%s1736_s8 + $0x20] sm:$0xff] %v1031_v42  ;;  %v1012_v47 = vadd.f32 %v1011_v46, %v906_v44 }
 0x232   : > { %v1034_v48 = vadd.f32 %v1204_v19, %v1017_v45 }
 0x233   : > { %v1033_v49 = vadd.f32 %v1204_v19, %v1012_v47 }
 0x234   : > { %1042 = vst [vmem:[%s1736_s8 + $0x38] sm:$0xff] %v1034_v48 }
 0x235   : > { %1041 = vst [vmem:[%s1736_s8 + $0x30] sm:$0xff] %v1033_v49 }
 0x236 PF: > { %s15_s24 = sadd.s32 1, %s1616_s24   ;;  %s1895_s18 = smov %s1596_s19 }
 0x237   : > { %p12_p0 = scmp.ge.s32.totalorder %s15_s24, 17   ;;  %s1896_s19 = smov %s1704_s7 }
 0x238   : > { %s1897_s20 = smov %s1608_s22  ;;  %s1898_s21 = smov %s1612_s23 }
 0x239   : > { %s1899_s22 = smov %s1902_s25  ;;  %s1900_s23 = smov %s1906_s26 }
 0x23a   :  { %14 = sbr.rel (!%p12_p0) target bundleno = 4 (0x4), region = 177 }

</bundles_post_ra>
